<compile_context>
chip_gen: v7x
topology: tpu7x:2x2x1
jax: 0.10.0
libtpu: 0.0.40
codegen_flags: <defaults>
</compile_context>

<pallas_src>
import jax
import jax.numpy as jnp
from jax.experimental import pallas as pl
from jax.experimental.pallas import tpu as pltpu


# ----------------------------------------------------------------------------
# Pallas kernel: fused 2-layer MLP (Linear -> ReLU -> [Dropout=id] -> Linear)
# The kernel is layout-agnostic: with row-packing it simply sees wider rows and
# block-diagonal weights; the math is identical.
# ----------------------------------------------------------------------------
def _mlp_kernel(x_ref, w1_ref, b1_ref, w2_ref, b2_ref, o_ref):
    # hidden = relu(x @ W1 + b1)
    h = jnp.dot(x_ref[...], w1_ref[...], preferred_element_type=jnp.float32)
    h = jnp.maximum(h + b1_ref[...], 0.0)
    # Dropout(p=0.1): identity in eval mode.
    # TODO(synk): train-mode dropout (pltpu.prng_seed + prng_random_bits mask
    # with 1/(1-p) scaling) not implemented.
    o = jnp.dot(h, w2_ref[...], preferred_element_type=jnp.float32)
    o_ref[...] = (o + b2_ref[...]).astype(o_ref.dtype)


def _round_up(x, m):
    return -(-x // m) * m


# ----------------------------------------------------------------------------
# Wrapper
# ----------------------------------------------------------------------------
def ee_pose_encoder_forward(eepose, params):
    """Equivalent of ee_pose_Encoder.forward: (a, 9) -> (1, a*32)."""
    w1 = params["w1"]
    d_in = w1.shape[0]
    d_out = params["w2"].shape[1]

    # eepose = eepose.to(param dtype)
    x = eepose.astype(w1.dtype)
    a = x.shape[0]

    # Row-packing factor: pack P logical rows into one kernel row so the
    # output tile has 32*P dense lanes (128 when P == 4).  P divides `a`
    # exactly, so the wrapper reshapes are contiguous (free) and no pad/slice
    # is ever needed.
    if a % 4 == 0:
        P = 4
    elif a % 2 == 0:
        P = 2
    else:
        P = 1
    w1p, b1p, w2p, b2p = params["packed"][f"p{P}"]
    din_p = d_in * P
    hid_p = w1p.shape[1]
    out_p = d_out * P

    ap = a // P
    xp = x.reshape(ap, din_p)  # contiguous -> free metadata reshape

    # Batch tiling: one whole-array block for anything up to 1024 packed rows
    # (launch overhead dominates there anyway); for bigger batches use large
    # tiles (<=2048 packed rows ~= 8192 logical rows) while guaranteeing >=2
    # grid steps so the "parallel" axis can shard across v7x's 2 TensorCores.
    if ap <= 1024:
        tbp = ap                       # block == full array (no masking)
    else:
        tbp = min(2048, _round_up(pl.cdiv(ap, 2), 256))
    grid = (pl.cdiv(ap, tbp),)

    out = pl.pallas_call(
        _mlp_kernel,
        out_shape=jax.ShapeDtypeStruct((ap, out_p), jnp.float32),
        grid=grid,
        in_specs=[
            pl.BlockSpec((tbp, din_p), lambda i: (i, 0)),     # activations
            pl.BlockSpec((din_p, hid_p), lambda i: (0, 0)),   # W1 (resident)
            pl.BlockSpec((1, hid_p), lambda i: (0, 0)),       # b1 (resident)
            pl.BlockSpec((hid_p, out_p), lambda i: (0, 0)),   # W2 (resident)
            pl.BlockSpec((1, out_p), lambda i: (0, 0)),       # b2 (resident)
        ],
        out_specs=pl.BlockSpec((tbp, out_p), lambda i: (i, 0)),
        compiler_params=pltpu.CompilerParams(
            dimension_semantics=("parallel",),
            vmem_limit_bytes=32 * 1024 * 1024,
        ),
    )(xp, w1p, b1p, w2p, b2p)

    # (a/P, 32*P) -> (1, a*32): contiguous, free metadata reshape.
    return out.reshape(1, a * d_out)


# ----------------------------------------------------------------------------
# Deterministic parameter init (PyTorch nn.Linear default: U(-1/sqrt(fan_in), .))
# plus one-time construction of the row-packed (block-diagonal) weights.
# ----------------------------------------------------------------------------
def _init_linear(key, d_in, d_out):
    kw, kb = jax.random.split(key)
    bound = float(d_in) ** -0.5
    # PyTorch stores weight as (out, in); we keep the GEMM layout (in, out).
    w = jax.random.uniform(kw, (d_in, d_out), jnp.float32, -bound, bound)
    b = jax.random.uniform(kb, (1, d_out), jnp.float32, -bound, bound)
    return w, b


def _pack(w1, b1, w2, b2, p):
    eye = jnp.eye(p, dtype=w1.dtype)
    return (jnp.kron(eye, w1), jnp.tile(b1, (1, p)),
            jnp.kron(eye, w2), jnp.tile(b2, (1, p)))


def init_ee_pose_encoder_params(key, proprio_dim=9):
    k1, k2 = jax.random.split(key)
    w1, b1 = _init_linear(k1, proprio_dim, 16)
    w2, b2 = _init_linear(k2, 16, 32)
    packed = {f"p{p}": _pack(w1, b1, w2, b2, p) for p in (1, 2, 4)}
    return {"w1": w1, "b1": b1, "w2": w2, "b2": b2, "packed": packed}


if __name__ == "__main__":
    key = jax.random.PRNGKey(0)
    pkey, dkey = jax.random.split(key)
    params = init_ee_pose_encoder_params(pkey, proprio_dim=9)

    fwd = jax.jit(ee_pose_encoder_forward)

    def ref(x):
        h = jnp.maximum(x @ params["w1"] + params["b1"], 0.0)
        o = h @ params["w2"] + params["b2"]
        return o.reshape(1, -1)

    # a=2   -> P=2 path (the module's demo size)
    # a=5   -> P=1 fallback path (odd batch)
    # a=4608-> P=4 lane-dense path with grid=2 and a ragged boundary block
    for a in (2, 5, 4608):
        eepose = jax.random.normal(jax.random.fold_in(dkey, a), (a, 9),
                                   jnp.float32)
        out = jax.block_until_ready(fwd(eepose, params))
        assert out.shape == (1, a * 32), (a, out.shape)
        assert bool(jnp.all(jnp.isfinite(out))), a
        assert bool(jnp.allclose(out, ref(eepose), atol=1e-4, rtol=1e-4)), a

    print("KERNEL_OK")
</pallas_src>

<mosaic_0001>
module attributes {stable_mosaic.version = 11 : i64} {
  func.func @_mlp_kernel(%arg0: i32, %arg1: memref<1x18xf32, #tpu.memory_space<vmem>>, %arg2: memref<18x32xf32, #tpu.memory_space<vmem>>, %arg3: memref<1x32xf32, #tpu.memory_space<vmem>>, %arg4: memref<32x64xf32, #tpu.memory_space<vmem>>, %arg5: memref<1x64xf32, #tpu.memory_space<vmem>>, %arg6: memref<1x64xf32, #tpu.memory_space<vmem>>) attributes {dimension_semantics = [#tpu.dimension_semantics<parallel>], iteration_bounds = array<i64: 1>, scalar_prefetch = 0 : i64, scratch_operands = 0 : i64, tpu.core_type = #tpu.core_type<tc>, window_params = [{transform_indices = @transform_0, window_bounds = array<i64: 1, 18>}, {pipeline_mode = #tpu.pipeline_mode<synchronous>, transform_indices = @transform_1, window_bounds = array<i64: 18, 32>}, {pipeline_mode = #tpu.pipeline_mode<synchronous>, transform_indices = @transform_2, window_bounds = array<i64: 1, 32>}, {pipeline_mode = #tpu.pipeline_mode<synchronous>, transform_indices = @transform_3, window_bounds = array<i64: 32, 64>}, {pipeline_mode = #tpu.pipeline_mode<synchronous>, transform_indices = @transform_4, window_bounds = array<i64: 1, 64>}, {transform_indices = @transform_5, window_bounds = array<i64: 1, 64>}]} {
    %c0 = arith.constant 0 : index
    %c0_0 = arith.constant 0 : index
    %0 = vector.load %arg1[%c0, %c0_0] : memref<1x18xf32, #tpu.memory_space<vmem>>, vector<1x18xf32>
    %c0_1 = arith.constant 0 : index
    %c0_2 = arith.constant 0 : index
    %1 = vector.load %arg2[%c0_1, %c0_2] : memref<18x32xf32, #tpu.memory_space<vmem>>, vector<18x32xf32>
    %cst = arith.constant dense<0.000000e+00> : vector<1x32xf32>
    %2 = tpu.matmul %0, %1, %cst {dimension_numbers = #tpu.dot_dimension_numbers<[1], [0], [0], [1], [0, 0, 1, 1], [], []>} : vector<1x18xf32>, vector<18x32xf32>, vector<1x32xf32> -> vector<1x32xf32>
    %c0_3 = arith.constant 0 : index
    %c0_4 = arith.constant 0 : index
    %3 = vector.load %arg3[%c0_3, %c0_4] : memref<1x32xf32, #tpu.memory_space<vmem>>, vector<1x32xf32>
    %4 = arith.addf %2, %3 : vector<1x32xf32>
    %cst_5 = arith.constant 0.000000e+00 : f32
    %5 = vector.broadcast %cst_5 : f32 to vector<1x32xf32>
    %6 = arith.maximumf %4, %5 : vector<1x32xf32>
    %c0_6 = arith.constant 0 : index
    %c0_7 = arith.constant 0 : index
    %7 = vector.load %arg4[%c0_6, %c0_7] : memref<32x64xf32, #tpu.memory_space<vmem>>, vector<32x64xf32>
    %cst_8 = arith.constant dense<0.000000e+00> : vector<1x64xf32>
    %8 = tpu.matmul %6, %7, %cst_8 {dimension_numbers = #tpu.dot_dimension_numbers<[1], [0], [0], [1], [0, 0, 1, 1], [], []>} : vector<1x32xf32>, vector<32x64xf32>, vector<1x64xf32> -> vector<1x64xf32>
    %c0_9 = arith.constant 0 : index
    %c0_10 = arith.constant 0 : index
    %9 = vector.load %arg5[%c0_9, %c0_10] : memref<1x64xf32, #tpu.memory_space<vmem>>, vector<1x64xf32>
    %10 = arith.addf %8, %9 : vector<1x64xf32>
    %c0_11 = arith.constant 0 : index
    %c0_12 = arith.constant 0 : index
    %11 = vector.load %arg6[%c0_11, %c0_12] : memref<1x64xf32, #tpu.memory_space<vmem>>, vector<1x64xf32>
    tpu.vector_store %arg6[%c0_11, %c0_12], %10 {strides = array<i32>} : memref<1x64xf32, #tpu.memory_space<vmem>>, vector<1x64xf32>,
    return
  }
  func.func @transform_0(%arg0: i32) -> (i32, i32) {
    %c0_i32 = arith.constant 0 : i32
    %c0_i32_0 = arith.constant 0 : i32
    return %arg0, %c0_i32 : i32, i32
  }
  func.func @transform_1(%arg0: i32) -> (i32, i32) {
    %c0_i32 = arith.constant 0 : i32
    %c0_i32_0 = arith.constant 0 : i32
    %c0_i32_1 = arith.constant 0 : i32
    return %c0_i32, %c0_i32_0 : i32, i32
  }
  func.func @transform_2(%arg0: i32) -> (i32, i32) {
    %c0_i32 = arith.constant 0 : i32
    %c0_i32_0 = arith.constant 0 : i32
    %c0_i32_1 = arith.constant 0 : i32
    return %c0_i32, %c0_i32_0 : i32, i32
  }
  func.func @transform_3(%arg0: i32) -> (i32, i32) {
    %c0_i32 = arith.constant 0 : i32
    %c0_i32_0 = arith.constant 0 : i32
    %c0_i32_1 = arith.constant 0 : i32
    return %c0_i32, %c0_i32_0 : i32, i32
  }
  func.func @transform_4(%arg0: i32) -> (i32, i32) {
    %c0_i32 = arith.constant 0 : i32
    %c0_i32_0 = arith.constant 0 : i32
    %c0_i32_1 = arith.constant 0 : i32
    return %c0_i32, %c0_i32_0 : i32, i32
  }
  func.func @transform_5(%arg0: i32) -> (i32, i32) {
    %c0_i32 = arith.constant 0 : i32
    %c0_i32_0 = arith.constant 0 : i32
    return %arg0, %c0_i32 : i32, i32
  }
}

</mosaic_0001>

<bundles_post_ra>
// kernel: ee_pose_encoder_forward.1
= control target key start
LH: loop header
LB: loop body
LE: loop exit
PB: predicated region body
PF: predicated region fallthrough
CT: control target
= control target key end

     0   :  { %10 = vsyncpa [#allocation3], 0  ;;  %s434_s0 = inlined_call_operand.vmem [shape: f32[1,18], index: 0, kind: input, shape index: {}]   ;;  %s435_s1 = inlined_call_operand.hbm [shape: f32[18,32], index: 1, kind: input, shape index: {}]   ;;  %s436_s2 = inlined_call_operand.vmem [shape: f32[1,32], index: 2, kind: input, shape index: {}]   ;;  %s437_s3 = inlined_call_operand.hbm [shape: f32[32,64], index: 3, kind: input, shape index: {}]   ;;  %s438_s4 = inlined_call_operand.vmem [shape: f32[1,64], index: 4, kind: input, shape index: {}]   ;;  %s439_s5 = inlined_call_operand.hbm [shape: f32[1,64], index: 5, kind: output, shape index: {}]  }
   0x1   :  { %11 = vsyncpa [#allocation6], 0 }
   0x2   :  { %12 = vsyncpa [#allocation4], 0  ;;  %s351_s18 = smov [#allocation2]   ;;  %s279_s22 = scalar_lea.hbm %s435_s1, 384 }
   0x3   :  { %s20_s19 = sshll.u32 %s351_s18, 4  ;;  %p280_p0 = scmp.ne.s32.totalorder %s435_s1, %s279_s22  ;;  %s21_s19 = int_to_ptr.vmem [resolvable:$true] %s20_s19 }
   0x4   :  { %p283_p1 = scmp.lt.u32.totalorder %s279_s22, %s435_s1 }
   0x6   :  { %p285_p2 = pnand %p283_p1, %p280_p0 }
   0x8   :  { %288 = shalt.err (!%p285_p2)
}
   0x9   :  { %s289_s27 = scalar_lea.vmem %s21_s19, 384  ;;  %p294_p4 = scmp.lt.s32.totalorder %s21_s19, %s21_s19 }
   0xa   :  { %p290_p3 = scmp.ne.s32.totalorder %s21_s19, %s289_s27  ;;  %p295_p5 = scmp.lt.s32.totalorder %s289_s27, %s289_s27 }
   0xc   :  { %p296_p6 = por %p295_p5, %p294_p4 }
   0xe   :  { %p297_p7 = pnand %p296_p6, %p290_p3 }
  0x10   :  { %300 = shalt.err (!%p297_p7)
}
  0x11   :  { %s352_s28 = smov 128   ;;  %s353_s29 = smov 8  }
  0x12   :  { %26 = dma.hbm_to_vmem [thread:$0]  %s435_s1, 384, %s21_s19, [#allocation3], %s352_s28, %s352_s28, %s353_s29  }
  0x13   :  { %s354_s7 = smov [#allocation5]   ;;  %s301_s11 = scalar_lea.hbm %s437_s3, 512 }
  0x14   :  { %s34_s8 = sshll.u32 %s354_s7, 4  ;;  %p302_p8 = scmp.ne.s32.totalorder %s437_s3, %s301_s11  ;;  %s35_s8 = int_to_ptr.vmem [resolvable:$true] %s34_s8 }
  0x15   :  { %p305_p9 = scmp.lt.u32.totalorder %s301_s11, %s437_s3 }
  0x17   :  { %p307_p10 = pnand %p305_p9, %p302_p8 }
  0x19   :  { %310 = shalt.err (!%p307_p10)
}
  0x1a   :  { %s311_s16 = scalar_lea.vmem %s35_s8, 512  ;;  %p316_p12 = scmp.lt.s32.totalorder %s35_s8, %s35_s8 }
  0x1b   :  { %p312_p11 = scmp.ne.s32.totalorder %s35_s8, %s311_s16  ;;  %p317_p13 = scmp.lt.s32.totalorder %s311_s16, %s311_s16 }
  0x1d   :  { %p318_p0 = por %p317_p13, %p316_p12 }
  0x1f   :  { %p319_p1 = pnand %p318_p0, %p312_p11 }
  0x21   :  { %322 = shalt.err (!%p319_p1)
}
  0x22   :  { %40 = dma.hbm_to_vmem [thread:$0]  %s437_s3, 512, %s35_s8, [#allocation6], %s352_s28, %s352_s28, %s353_s29  }
  0x23   :  { %345 = dma.done.wait [#allocation3], 384  }
  0x24   :  { %346 = vsyncadd [#allocation3], 4294966912 }
  0x25   :  { %347 = dma.done.wait [#allocation6], 512  }
  0x26   :  { %348 = vsyncadd [#allocation6], 4294966784  ;;  %v355_v0 = vmov 0.0|0.0   ;;  %vm356_vm0 = vmmov 0   ;;  %v357_v1 = vmov 0.0   ;;  %v50_v2 = vld [vmem:[#allocation2] sm:$0xff] }
  0x27   :  { %262 = vmatprep.subr.bf16.mxu0 %v355_v0  ;;  %248 = vmatprep.mubr.msk.f32.mxu0 %vm356_vm0, %v357_v1  ;;  %v51_v3 = vld [vmem:[#allocation2 + $0x8] sm:$0xff]  ;;  %v133_v5 = vld [vmem:[#allocation5] sm:$0xff]  ;;  %v134_v6 = vld [vmem:[#allocation5 + $0x8] sm:$0xff]  ;;  %vm58_vm1 = vcmask 1041408   ;;  %vm54_vm2 = vcmask 146432   ;;  %vm138_vm3 = vcmask 261120  }
  0x28   :  { %265 = vmatprep.subr.bf16.mxu1 %v355_v0  ;;  %259 = vmatprep.mubr.msk.f32.mxu1 %vm356_vm0, %v357_v1  ;;  %v263_v4 = vpack.c.bf16 %v51_v3, %v50_v2  ;;  %v266_v7 = vpack.c.bf16 %v134_v6, %v133_v5  ;;  %v52_v8 = vld [vmem:[#allocation2 + $0x10] sm:$0x3]  ;;  %v49_v9 = vld [vmem:[%s434_s0] sm:$0x1]  ;;  %v135_v10 = vld [vmem:[#allocation5 + $0x10] sm:$0xff]  ;;  %s358_s22 = smov [#allocation7]  }
  0x29   :  { %v136_v11 = vld [vmem:[#allocation5 + $0x18] sm:$0xff]  ;;  %v53_v13 = vld [vmem:[%s436_s2] sm:$0x1]  ;;  %s220_s23 = sshll.u32 %s358_s22, 4  ;;  %vm212_vm4 = vcmask 516096   ;;  %s221_s23 = int_to_ptr.vmem [resolvable:$true] %s220_s23 }
  0x2a   :  { %264 = vmatpush3.bf16.msra.mxu0 %v263_v4  ;;  %267 = vmatpush3.bf16.msra.mxu1 %v266_v7  ;;  %v269_v12 = vpack.c.bf16 %v136_v11, %v135_v10  ;;  %v137_v18 = vld [vmem:[%s438_s4] sm:$0x1]  ;;  %s323_s24 = scalar_lea.vmem %s221_s23, 16  ;;  %s327_s2 = scalar_lea.vmem %s221_s23, 32 }
  0x2b   :  { %246 = vmatprep.subr.mxu0 %v357_v1  ;;  %268 = vmatprep.subr.bf16.mxu1 %v355_v0  ;;  %p324_p2 = scmp.ne.s32.totalorder %s221_s23, %s323_s24  ;;  %p328_p3 = scmp.lt.s32.totalorder %s221_s23, %s221_s23 }
  0x2c   :  { %p329_p4 = scmp.lt.s32.totalorder %s327_s2, %s323_s24 }
  0x2e   :  { %247 = vmatpush3.msk.msra.mxu0 %vm58_vm1, %v52_v8  ;;  %270 = vmatpush3.bf16.msra.mxu1 %v269_v12  ;;  %p330_p5 = por %p329_p4, %p328_p3 }
  0x2f   :  { %249 = vmatmul.mubr.msk.f32.vlgmr.msra.gmra.mrb[0].mxu0 %vm54_vm2, %v49_v9 }
  0x30   :  { %p331_p6 = pnand %p330_p5, %p324_p2 }
 0x102   :  { %v128_v14 = vpop.f32.mrb[0].mxu0 }
 0x103   :  { %v129_v15 = vadd.f32 %v128_v14, %v53_v13  ;;  %v250_v16 = vpop.f32.mrb[1].mxu0 }
 0x105   :  { %v132_v17 = vmax.f32 %v129_v15, 0.0 }
 0x107   :  { %260 = vmatmul.mubr.msk.f32.vlgmr.msra.gmra.mrb[0].mxu1 %vm138_vm3, %v132_v17 }
 0x1da   :  { %v208_v19 = vpop.f32.mrb[0].mxu1 }
 0x1db   :  { %v209_v20 = vadd.f32 %v208_v19, %v137_v18  ;;  %v261_v21 = vpop.f32.mrb[1].mxu1 }
 0x1dd   :  { %213 = vst.msk [vmem:[#allocation7] sm:$0x1] %vm212_vm4, %v209_v20 }
 0x1de   :  { %334 = shalt.err (!%p331_p6)
}
 0x1df   :  { %s335_s4 = scalar_lea.hbm %s439_s5, 16 }
 0x1e0   :  { %p336_p7 = scmp.ne.s32.totalorder %s439_s5, %s335_s4  ;;  %p339_p8 = scmp.lt.u32.totalorder %s335_s4, %s439_s5 }
 0x1e2   :  { %p341_p9 = pnand %p339_p8, %p336_p7 }
 0x1e4   :  { %344 = shalt.err (!%p341_p9)
}
 0x1e5   :  { %223 = dma.vmem_to_hbm [thread:$0]  %s221_s23, 16, %s439_s5, [#allocation4]  }
 0x1e6   :  { %349 = dma.done.wait [#allocation4], 16  }
 0x1e7   :  { %350 = vsyncadd [#allocation4], 4294967280 }
 0x1e8   :  { %227 = vsyncpa [#allocation3], 1 }
 0x1e9   :  { %228 = vsyncpa [#allocation6], 1 }
 0x1ea   :  { %229 = vsyncpa [#allocation4], 1 }

</bundles_post_ra>
